<compile_context>
chip_gen: v5e
topology: v5e:2x2
jax: 0.10.0
libtpu: 0.0.40
codegen_flags: <defaults>
</compile_context>

<pallas_src>
import functools

import jax
import jax.numpy as jnp
from jax import lax
from jax.experimental import pallas as pl
from jax.experimental.pallas import tpu as pltpu


# --------------------------------------------------------------------------- #
# pltpu.roll convention (defensive runtime probe; expected to match np.roll).
# --------------------------------------------------------------------------- #
_ROLL_NUMPY_CONVENTION = True  # np.roll: result[i] = x[(i - shift) % n]

_VMEM_SPEC = pl.BlockSpec(memory_space=pltpu.MemorySpace.VMEM)


def _roll_probe_kernel(x_ref, o_ref):
    o_ref[...] = pltpu.roll(x_ref[...], 1, 0)


def _detect_roll_convention():
    """Probe pltpu.roll's rotation direction once (runs eagerly, tiny)."""
    global _ROLL_NUMPY_CONVENTION
    x = jnp.broadcast_to(jnp.arange(8, dtype=jnp.float32)[:, None], (8, 128))
    y = pl.pallas_call(_roll_probe_kernel,
                       out_shape=jax.ShapeDtypeStruct((8, 128), jnp.float32),
                       in_specs=[_VMEM_SPEC], out_specs=_VMEM_SPEC)(x)
    _ROLL_NUMPY_CONVENTION = bool(y[1, 0] == 0.0)  # np.roll(x, 1, 0)[1] == x[0]


def _roll_shift(k, n):
    """Shift amount so that pltpu.roll gives result[i] = x[(i + k) % n]."""
    return (-k) % n if _ROLL_NUMPY_CONVENTION else k % n


# --------------------------------------------------------------------------- #
# The fused forward-pass kernel.
# --------------------------------------------------------------------------- #
def _net_kernel(x_ref, w1_ref, b1_ref, w2a_ref, b2a_ref, w2b_ref, b2b_ref,
                w3_ref, b3_ref, w4a_ref, b4a_ref, w4b_ref, b4b_ref,
                wfc_ref, bfc_ref, out_ref):
    """Whole-network forward for one block of images.

    Activations are 2-D f32 arrays (rows, lanes) with rows = images * 28 (one
    28-row slab per image) and lanes = spatial_width * channels (lane-dense).
    """
    f32 = jnp.float32
    cdt = w1_ref.dtype                     # matmul-input dtype (bf16 or f32)
    rows = x_ref.shape[0]                  # images_per_block * 28

    def shift_rows(v, k):                  # result[r, :] = v[(r + k) % rows, :]
        if k == 0:
            return v
        return pltpu.roll(v, _roll_shift(k, v.shape[0]), 0)

    def shift_lanes(v, k):                 # result[:, l] = v[:, (l + k) % lanes]
        return pltpu.roll(v, _roll_shift(k, v.shape[1]), 1)

    def conv(act, w_ref_, b_ref_, *, row_stride, pad, relu):
        """Banded conv: (rows, Lin) f32 -> (rows, Lout) f32.

        w_ref_ holds KH matrices (Lin, Lout); the kx taps and input channels
        live in the contraction, tap ky reads rows shifted by
        (ky - pad) * row_stride (stride encodes the pooled row layout).
        """
        kh = w_ref_.shape[0]
        acc = None
        for ky in range(kh):               # static unroll -> KH MXU matmuls
            lhs = shift_rows(act, (ky - pad) * row_stride).astype(cdt)
            part = jnp.dot(lhs, w_ref_[ky], preferred_element_type=f32)
            acc = part if acc is None else acc + part
        acc = acc + b_ref_[...]
        return jnp.maximum(acc, 0.0) if relu else acc

    # Slab-relative row index; used to zero rows that act as conv zero-padding.
    off = lax.broadcasted_iota(jnp.int32, (rows, 1), 0) % 28

    def zero_invalid_rows(v, row_stride, n_valid):
        ok = (off % row_stride == 0) & (off < row_stride * n_valid)
        return jnp.where(ok, v, 0.0)

    def maxpool2(v, row_stride, channels):
        # 2x2/2 max pool as roll+max; the pooled (py, px) value lands at row
        # 2*py*row_stride, lane 2*px*channels (consumed by the next layer's
        # banded weights -- no compaction needed).
        v = jnp.maximum(v, shift_rows(v, row_stride))
        return jnp.maximum(v, shift_lanes(v, channels))

    x = x_ref[...].astype(f32)                                         # (rows, 28)

    # conv1 (5x5, 1->16) + ReLU + maxpool  -> 12x12x16 (row stride 2, lane stride 32)
    a = conv(x, w1_ref, b1_ref, row_stride=1, pad=0, relu=True)        # (rows, 384)
    p1 = zero_invalid_rows(maxpool2(a, 1, 16), 2, 12)

    # ResidualBlock(16): y = relu(conv(x)); y = conv(y); relu(x + y)
    y = conv(p1, w2a_ref, b2a_ref, row_stride=2, pad=1, relu=True)
    y = zero_invalid_rows(y, 2, 12)
    y = conv(y, w2b_ref, b2b_ref, row_stride=2, pad=1, relu=False)
    r1 = jnp.maximum(p1 + y, 0.0)

    # conv2 (5x5, 16->32) + ReLU + maxpool -> 4x4x32 (row stride 4, lane stride 64)
    a = conv(r1, w3_ref, b3_ref, row_stride=2, pad=0, relu=True)       # (rows, 256)
    p2 = zero_invalid_rows(maxpool2(a, 2, 32), 4, 4)

    # ResidualBlock(32)
    y = conv(p2, w4a_ref, b4a_ref, row_stride=4, pad=1, relu=True)
    y = zero_invalid_rows(y, 4, 4)
    y = conv(y, w4b_ref, b4b_ref, row_stride=4, pad=1, relu=False)
    r2 = jnp.maximum(p2 + y, 0.0)

    # fc(512 -> 10): contract the 4 stored spatial rows against the re-laid-out
    # fc weight (torch's NCHW flatten order is baked into wfc by the wrapper).
    logits_rows = None
    for yy in range(4):
        lhs = shift_rows(r2, 4 * yy).astype(cdt)
        part = jnp.dot(lhs, wfc_ref[yy], preferred_element_type=f32)
        logits_rows = part if logits_rows is None else logits_rows + part

    # Pick row 0 of each 28-row image slab -> (images, 10), add fc bias.
    nb = out_ref.shape[0]
    img = lax.broadcasted_iota(jnp.int32, (nb, rows), 0)
    row = lax.broadcasted_iota(jnp.int32, (nb, rows), 1)
    sel = (row == img * 28).astype(f32)
    out_ref[...] = jnp.dot(sel, logits_rows, preferred_element_type=f32) + bfc_ref[...]


# --------------------------------------------------------------------------- #
# Wrapper-side weight re-layout (one-time, plain JAX).
# --------------------------------------------------------------------------- #
def _conv_band_weights(w, *, in_w, out_w, pad, ls_in, ls_out):
    """Torch conv weight (Cout, Cin, KH, KW) -> (KH, in_w*ls_in, out_w*ls_out).

    Banded matrices folding the kx taps and input channels into the matmul
    contraction: input lane x*ls_in + ci contributes to output lane
    ox*ls_out + co with weight w[co, ci, ky, x - ox + pad] (zero outside the
    tap range -- this also implements the conv's zero padding in x).
    """
    cout, cin, kh, kw = w.shape
    x_idx = jnp.arange(in_w)[:, None]
    ox_idx = jnp.arange(out_w)[None, :]
    kx = x_idx - ox_idx + pad
    valid = (kx >= 0) & (kx < kw)
    kx_c = jnp.clip(kx, 0, kw - 1)
    mats = []
    for ky in range(kh):
        wk = jnp.transpose(w[:, :, ky, :], (2, 1, 0))              # (kw, cin, cout)
        m = jnp.where(valid[:, :, None, None], wk[kx_c], 0.0)      # (in_w, out_w, cin, cout)
        m = jnp.transpose(m, (0, 2, 1, 3))                         # (in_w, cin, out_w, cout)
        m = jnp.pad(m, ((0, 0), (0, ls_in - cin), (0, 0), (0, ls_out - cout)))
        mats.append(m.reshape(in_w * ls_in, out_w * ls_out))
    return jnp.stack(mats, axis=0)


def _fc_band_weights(fc_w):
    """torch Linear weight (10, 512) -> (4, 256, 10).

    Consumes the kernel's 4x4x32 layout (lane = 64*x + c at stored row 4*y) in
    torch's NCHW-flatten order f = c*16 + y*4 + x, so no runtime transpose.
    """
    w4 = fc_w.reshape(10, 32, 4, 4)                    # (j, c, y, x)
    mats = []
    for y in range(4):
        m = jnp.transpose(w4[:, :, y, :], (2, 1, 0))   # (x, c, j)
        m = jnp.pad(m, ((0, 0), (0, 32), (0, 0)))      # pad c to the 64-lane group
        mats.append(m.reshape(4 * 64, 10))
    return jnp.stack(mats, axis=0)


def _tile_bias(b, groups, group_size):
    pad = group_size - b.shape[0]
    if pad:
        b = jnp.concatenate([b, jnp.zeros((pad,), b.dtype)])
    return jnp.tile(b, groups).reshape(1, groups * group_size)


# --------------------------------------------------------------------------- #
# Forward pass.
# --------------------------------------------------------------------------- #
def net_forward(params, x, *, compute_dtype=jnp.bfloat16, block_images=8):
    """Net forward: x (N, 1, 28, 28) NCHW -> logits (N, 10)."""
    n = x.shape[0]
    assert x.shape[1:] == (1, 28, 28), x.shape
    cdt = compute_dtype

    # -- batch blocking: one grid step handles `nb` images ---------------------
    nb = min(block_images, n)
    if nb % 2:
        nb += 1                          # nb*28 rows must be a multiple of 8
    n_pad = pl.cdiv(n, nb) * nb
    if n_pad > nb and nb % 8:
        nb = 8                           # multi-block output tile needs nb % 8 == 0
        n_pad = pl.cdiv(n, nb) * nb
    if n_pad != n:
        x = jnp.pad(x, ((0, n_pad - n), (0, 0), (0, 0), (0, 0)))
    x2d = x.reshape(n_pad * 28, 28).astype(jnp.float32)

    # -- fold conv taps / pooled layout / torch flatten into the weights -------
    w1 = _conv_band_weights(params['c1_w'], in_w=28, out_w=24, pad=0, ls_in=1, ls_out=16).astype(cdt)
    w2a = _conv_band_weights(params['r1a_w'], in_w=12, out_w=12, pad=1, ls_in=32, ls_out=32).astype(cdt)
    w2b = _conv_band_weights(params['r1b_w'], in_w=12, out_w=12, pad=1, ls_in=32, ls_out=32).astype(cdt)
    w3 = _conv_band_weights(params['c2_w'], in_w=12, out_w=8, pad=0, ls_in=32, ls_out=32).astype(cdt)
    w4a = _conv_band_weights(params['r2a_w'], in_w=4, out_w=4, pad=1, ls_in=64, ls_out=64).astype(cdt)
    w4b = _conv_band_weights(params['r2b_w'], in_w=4, out_w=4, pad=1, ls_in=64, ls_out=64).astype(cdt)
    wfc = _fc_band_weights(params['fc_w']).astype(cdt)

    b1 = _tile_bias(params['c1_b'], 24, 16)
    b2a = _tile_bias(params['r1a_b'], 12, 32)
    b2b = _tile_bias(params['r1b_b'], 12, 32)
    b3 = _tile_bias(params['c2_b'], 8, 32)
    b4a = _tile_bias(params['r2a_b'], 4, 64)
    b4b = _tile_bias(params['r2b_b'], 4, 64)
    bfc = params['fc_b'].reshape(1, 10)

    weights = (w1, b1, w2a, b2a, w2b, b2b, w3, b3, w4a, b4a, w4b, b4b, wfc, bfc)

    def full_spec(a):                    # whole array, staged into VMEM once
        return pl.BlockSpec(a.shape, lambda i: (0,) * a.ndim)

    in_specs = [pl.BlockSpec((nb * 28, 28), lambda i: (i, 0))]
    in_specs += [full_spec(a) for a in weights]

    out = pl.pallas_call(
        _net_kernel,
        out_shape=jax.ShapeDtypeStruct((n_pad, 10), jnp.float32),
        grid=(n_pad // nb,),
        in_specs=in_specs,
        out_specs=pl.BlockSpec((nb, 10), lambda i: (i, 0)),
        compiler_params=pltpu.CompilerParams(
            dimension_semantics=("parallel",),
            vmem_limit_bytes=48 * 1024 * 1024),
    )(x2d, *weights)
    return out[:n]


# --------------------------------------------------------------------------- #
# Parameters + pure-JAX reference (validation).
# --------------------------------------------------------------------------- #
def init_params(key):
    ks = jax.random.split(key, 14)
    s = 0.05
    w = lambda k, shape: s * jax.random.normal(k, shape, jnp.float32)
    return {
        'c1_w': w(ks[0], (16, 1, 5, 5)),    'c1_b': w(ks[1], (16,)),
        'r1a_w': w(ks[2], (16, 16, 3, 3)),  'r1a_b': w(ks[3], (16,)),
        'r1b_w': w(ks[4], (16, 16, 3, 3)),  'r1b_b': w(ks[5], (16,)),
        'c2_w': w(ks[6], (32, 16, 5, 5)),   'c2_b': w(ks[7], (32,)),
        'r2a_w': w(ks[8], (32, 32, 3, 3)),  'r2a_b': w(ks[9], (32,)),
        'r2b_w': w(ks[10], (32, 32, 3, 3)), 'r2b_b': w(ks[11], (32,)),
        'fc_w': w(ks[12], (10, 512)),       'fc_b': w(ks[13], (10,)),
    }


def ref_forward(params, x_nchw):
    hp = lax.Precision.HIGHEST

    def conv(x, w_, b_, pad):
        y = lax.conv_general_dilated(x, w_, (1, 1), pad,
                                     dimension_numbers=('NCHW', 'OIHW', 'NCHW'),
                                     precision=hp)
        return y + b_[None, :, None, None]

    def mp(x):
        return lax.reduce_window(x, -jnp.inf, lax.max,
                                 (1, 1, 2, 2), (1, 1, 2, 2), 'VALID')

    x = mp(jax.nn.relu(conv(x_nchw, params['c1_w'], params['c1_b'], 'VALID')))
    y = jax.nn.relu(conv(x, params['r1a_w'], params['r1a_b'], 'SAME'))
    x = jax.nn.relu(x + conv(y, params['r1b_w'], params['r1b_b'], 'SAME'))
    x = mp(jax.nn.relu(conv(x, params['c2_w'], params['c2_b'], 'VALID')))
    y = jax.nn.relu(conv(x, params['r2a_w'], params['r2a_b'], 'SAME'))
    x = jax.nn.relu(x + conv(y, params['r2b_w'], params['r2b_b'], 'SAME'))
    x = x.reshape(x.shape[0], -1)
    return jnp.dot(x, params['fc_w'].T, precision=hp) + params['fc_b']


if __name__ == "__main__":
    _detect_roll_convention()  # one-time probe of pltpu.roll's direction

    key = jax.random.PRNGKey(0)
    kp, kx = jax.random.split(key)
    params = init_params(kp)
    # fc = Linear(512, 10) with 32 channels after two pools => 28x28 input (MNIST).
    x = jax.random.normal(kx, (2, 1, 28, 28), jnp.float32)

    fwd = jax.jit(functools.partial(net_forward, compute_dtype=jnp.bfloat16))
    out = jax.block_until_ready(fwd(params, x))
    ref = jax.block_until_ready(ref_forward(params, x))

    assert out.shape == (2, 10), out.shape
    # bf16 MXU inputs (f32 accumulation) -> allow ~1% of the O(0.5) logit scale.
    max_err = float(jnp.max(jnp.abs(out - ref)))
    assert jnp.allclose(out, ref, atol=2e-2, rtol=2e-2), f"max abs diff {max_err}"
    print("KERNEL_OK")
</pallas_src>

<mosaic_0001>
module attributes {stable_mosaic.version = 11 : i64} {
  func.func @_roll_probe_kernel(%arg0: memref<8x128xf32, #tpu.memory_space<vmem>>, %arg1: memref<8x128xf32, #tpu.memory_space<vmem>>) attributes {dimension_semantics = [], scalar_prefetch = 0 : i64, scratch_operands = 0 : i64, tpu.core_type = #tpu.core_type<tc>} {
    %c0 = arith.constant 0 : index
    %c0_0 = arith.constant 0 : index
    %0 = vector.load %arg0[%c0, %c0_0] : memref<8x128xf32, #tpu.memory_space<vmem>>, vector<8x128xf32>
    %c1_i32 = arith.constant 1 : i32
    %1 = tpu.dynamic_rotate %0 by %c1_i32 dim 0 : vector<8x128xf32>, i32 -> vector<8x128xf32>
    %c0_1 = arith.constant 0 : index
    %c0_2 = arith.constant 0 : index
    %2 = vector.load %arg1[%c0_1, %c0_2] : memref<8x128xf32, #tpu.memory_space<vmem>>, vector<8x128xf32>
    tpu.vector_store %arg1[%c0_1, %c0_2], %1 {strides = array<i32>} : memref<8x128xf32, #tpu.memory_space<vmem>>, vector<8x128xf32>,
    return
  }
}

</mosaic_0001>

<bundles_post_ra>
// kernel: tpu_custom_call.1
= control target key start
LH: loop header
LB: loop body
LE: loop exit
PB: predicated region body
PF: predicated region fallthrough
CT: control target
= control target key end

     0   :  { %6 = vsyncpa [#allocation3], 0  ;;  %s115_s0 = inlined_call_operand.hbm [shape: f32[8,128], index: 0, kind: input, shape index: {}]   ;;  %s116_s1 = inlined_call_operand.hbm [shape: f32[8,128], index: 1, kind: output, shape index: {}]  }
   0x1   :  { %7 = vsyncpa [#allocation4], 0  ;;  %s13_s8 = sshll.u32 %s115_s0, 4  ;;  %s97_s9 = smov [#allocation2]   ;;  %s14_s8 = int_to_ptr.hbm [resolvable:$true] %s13_s8 }
   0x2   :  { %s15_s10 = sshll.u32 %s97_s9, 4  ;;  %s16_s10 = int_to_ptr.vmem [resolvable:$true] %s15_s10 }
   0x3   :  { %18 = dma.hbm_to_vmem [thread:$0]  %s14_s8, 128, %s16_s10, [#allocation3]  }
   0x4   :  { %93 = dma.done.wait [#allocation3], 128  }
   0x5   :  { %94 = vsyncadd [#allocation3], 4294967168  ;;  %s98_s11 = smov [#allocation5]   ;;  %s33_s15 = sshll.u32 %s116_s1, 4  ;;  %v23_v0 = vld [vmem:[#allocation2] sm:$0xff]  ;;  %s34_s15 = int_to_ptr.hbm [resolvable:$true] %s33_s15 }
   0x6   :  { %s31_s12 = sshll.u32 %s98_s11, 4  ;;  %v24_v1 = vrot.slane %v23_v0, 7  ;;  %s32_s12 = int_to_ptr.vmem [resolvable:$true] %s31_s12 }
   0x8   :  { %25 = vst [vmem:[#allocation5] sm:$0xff] %v24_v1 }
   0x9   :  { %36 = dma.vmem_to_hbm [thread:$0]  %s32_s12, 128, %s34_s15, [#allocation4]  }
   0xa   :  { %95 = dma.done.wait [#allocation4], 128  }
   0xb   :  { %96 = vsyncadd [#allocation4], 4294967168 }
   0xc   :  { %41 = vsyncpa [#allocation3], 1 }
   0xd   :  { %42 = vsyncpa [#allocation4], 1 }

</bundles_post_ra>
